<compile_context>
chip_gen: v7x
topology: tpu7x:2x2x1
jax: 0.10.0
libtpu: 0.0.40
codegen_flags: <defaults>
</compile_context>

<pallas_src>
import functools

import jax
import jax.numpy as jnp
import numpy as np
from jax import lax
from jax.experimental import pallas as pl
from jax.experimental.pallas import tpu as pltpu


def _round_up(x, m):
    return ((x + m - 1) // m) * m


# ----------------------------------------------------------------------------
# Generic tiled Linear: (N, K) @ (K, M) + b  — used for both the time-parallel
# input projection (x @ W_ih + b) and the hoisted vocab projection
# (h @ W_out + b_out).  Grid axes are fully parallel (megacore friendly).
# ----------------------------------------------------------------------------
def _linear_kernel(x_ref, w_ref, b_ref, o_ref):
    o_ref[...] = (
        jnp.dot(x_ref[...], w_ref[...], preferred_element_type=jnp.float32)
        + b_ref[...]
    ).astype(o_ref.dtype)


def pallas_linear(x, w, b, *, tile_n=256, tile_m=512, out_dtype=jnp.float32):
    """x: (N, K), w: (K, M), b: (1, M) -> (N, M) in out_dtype."""
    N, K = x.shape
    M = w.shape[1]
    tn = min(tile_n, _round_up(N, 8))
    tm = min(tile_m, _round_up(M, 128))
    Np, Mp = _round_up(N, tn), _round_up(M, tm)

    if Np != N:
        x = jnp.pad(x, ((0, Np - N), (0, 0)))
    if Mp != M:
        w = jnp.pad(w, ((0, 0), (0, Mp - M)))
        b = jnp.pad(b, ((0, 0), (0, Mp - M)))

    out = pl.pallas_call(
        _linear_kernel,
        out_shape=jax.ShapeDtypeStruct((Np, Mp), out_dtype),
        grid_spec=pltpu.PrefetchScalarGridSpec(
            num_scalar_prefetch=0,
            grid=(Np // tn, Mp // tm),
            in_specs=[
                pl.BlockSpec((tn, K), lambda n, m: (n, 0)),   # activations
                pl.BlockSpec((K, tm), lambda n, m: (0, m)),   # weights (V tiled)
                pl.BlockSpec((1, tm), lambda n, m: (0, m)),   # bias
            ],
            out_specs=pl.BlockSpec((tn, tm), lambda n, m: (n, m)),
        ),
        compiler_params=pltpu.CompilerParams(
            dimension_semantics=("parallel", "parallel")),
    )(x, w, b)
    return out[:N, :M]


# ----------------------------------------------------------------------------
# LSTM recurrence: only h_prev @ W_hh (per gate) + elementwise math per step.
# x @ W_ih + b is precomputed (per gate) and streamed in T_CHUNK-step blocks.
# h/c live in f32 VMEM scratch and carry across the sequential "arbitrary"
# time grid.
# ----------------------------------------------------------------------------
def _lstm_recurrence_kernel(xgi_ref, xgf_ref, xgg_ref, xgo_ref, w_hh_ref,
                            h_out_ref, h_ref, c_ref):
    @pl.when(pl.program_id(0) == 0)
    def _():
        h_ref[...] = jnp.zeros_like(h_ref)
        c_ref[...] = jnp.zeros_like(c_ref)

    # Per-gate recurrent weight slabs, loaded once per grid step (lane-aligned
    # per-gate outputs -> no cross-lane gate extraction inside the loop).
    w_i = w_hh_ref[0]
    w_f = w_hh_ref[1]
    w_g = w_hh_ref[2]
    w_o = w_hh_ref[3]

    t_chunk = h_out_ref.shape[0]

    def step(j, carry):
        h_prev, c_prev = carry                       # f32 (B, H)
        hp = h_prev.astype(w_i.dtype)                # bf16 cast only for the MXU
        gi = xgi_ref[j] + jnp.dot(hp, w_i, preferred_element_type=jnp.float32)
        gf = xgf_ref[j] + jnp.dot(hp, w_f, preferred_element_type=jnp.float32)
        gg = xgg_ref[j] + jnp.dot(hp, w_g, preferred_element_type=jnp.float32)
        go = xgo_ref[j] + jnp.dot(hp, w_o, preferred_element_type=jnp.float32)
        i_g = jax.nn.sigmoid(gi)                     # f32 elementwise (v5e-safe)
        f_g = jax.nn.sigmoid(gf)
        g_g = jnp.tanh(gg)
        o_g = jax.nn.sigmoid(go)
        c_new = f_g * c_prev + i_g * g_g
        h_new = o_g * jnp.tanh(c_new)
        h_out_ref[j] = h_new.astype(h_out_ref.dtype)
        return h_new, c_new

    h_last, c_last = lax.fori_loop(
        0, t_chunk, step, (h_ref[...], c_ref[...]), unroll=True)
    h_ref[...] = h_last
    c_ref[...] = c_last


def lstm_recurrence_pallas(xg_i, xg_f, xg_g, xg_o, w_hh4, *, h_dtype,
                           t_chunk=8):
    """xg_*: (T, Bp, H) f32 per-gate input projections; w_hh4: (4, H, H).

    Returns h for every timestep, shape (T, Bp, H) in h_dtype.
    """
    T, Bp, H = xg_i.shape
    tc = min(t_chunk, T)
    Tp = _round_up(T, tc)
    if Tp != T:
        pad = ((0, Tp - T), (0, 0), (0, 0))
        xg_i, xg_f, xg_g, xg_o = [
            jnp.pad(a, pad) for a in (xg_i, xg_f, xg_g, xg_o)]

    xg_spec = pl.BlockSpec((tc, Bp, H), lambda t: (t, 0, 0))
    grid_spec = pltpu.PrefetchScalarGridSpec(
        num_scalar_prefetch=0,
        grid=(Tp // tc,),
        in_specs=[xg_spec, xg_spec, xg_spec, xg_spec,
                  pl.BlockSpec((4, H, H), lambda t: (0, 0, 0))],
        out_specs=pl.BlockSpec((tc, Bp, H), lambda t: (t, 0, 0)),
        scratch_shapes=[pltpu.VMEM((Bp, H), jnp.float32),   # h state (f32)
                        pltpu.VMEM((Bp, H), jnp.float32)],  # c state (f32)
    )
    h_out = pl.pallas_call(
        _lstm_recurrence_kernel,
        out_shape=jax.ShapeDtypeStruct((Tp, Bp, H), h_dtype),
        grid_spec=grid_spec,
        compiler_params=pltpu.CompilerParams(
            dimension_semantics=("arbitrary",)),   # sequential recurrence
    )(xg_i, xg_f, xg_g, xg_o, w_hh4)
    return h_out[:T]


# ----------------------------------------------------------------------------
# Parameters (canonical f32, pre-transposed layouts) and forward pass.
# ----------------------------------------------------------------------------
def init_params(key, embed_size, hidden_size, vocab_size):
    """Deterministic parameter init; shapes match the PyTorch DecoderRNN."""
    ks = jax.random.split(key, 7)
    s = 1.0 / np.sqrt(hidden_size)
    emb = jax.random.normal(ks[0], (vocab_size, embed_size), jnp.float32) * 0.1
    # Stored pre-transposed relative to PyTorch: (in_features, 4H) / (H, V).
    w_ih = jax.random.uniform(ks[1], (embed_size, 4 * hidden_size), jnp.float32, -s, s)
    w_hh = jax.random.uniform(ks[2], (hidden_size, 4 * hidden_size), jnp.float32, -s, s)
    b_ih = jax.random.uniform(ks[3], (1, 4 * hidden_size), jnp.float32, -s, s)
    b_hh = jax.random.uniform(ks[4], (1, 4 * hidden_size), jnp.float32, -s, s)
    w_out = jax.random.uniform(ks[5], (hidden_size, vocab_size), jnp.float32, -s, s)
    b_out = jax.random.uniform(ks[6], (1, vocab_size), jnp.float32, -s, s)
    return dict(emb=emb, w_ih=w_ih, w_hh=w_hh, b=b_ih + b_hh,
                w_out=w_out, b_out=b_out)


def decoder_forward(params, features, captions, *,
                    compute_dtype=jnp.float32, t_chunk=8):
    """Mirrors DecoderRNN.forward.

    features: (B, E) f32, captions: (B, L) int32 -> logits (B, L, V) f32.
    compute_dtype=bf16 keeps f32 accumulation / f32 h,c / f32 gate math.
    """
    B, E = features.shape
    H = params["w_hh"].shape[0]
    V = params["w_out"].shape[1]
    L = captions.shape[1]
    T = L                                   # 1 feature step + (L-1) tokens

    cdt = compute_dtype
    emb_tab = params["emb"].astype(cdt)
    w_ih = params["w_ih"].astype(cdt)
    w_out = params["w_out"].astype(cdt)
    # Per-gate recurrent slabs: (4, H, H), slab k == W_hh[:, k*H:(k+1)*H].
    w_hh4 = jnp.transpose(params["w_hh"].reshape(H, 4, H), (1, 0, 2)).astype(cdt)

    # 1) Embedding gather emitted directly in time-major layout (only the tiny
    #    int caption matrix is transposed — no big activation transpose).
    caps_t = captions[:, :-1].T                              # (T-1, B) int32
    emb_t = jnp.take(emb_tab, caps_t, axis=0)                # (T-1, B, E)
    feat_t = features.astype(cdt)[None, :, :]                # (1, B, E)
    seq_t = jnp.concatenate([feat_t, emb_t], axis=0)         # (T, B, E)

    # 2) Pad batch to a multiple of 8 sublanes.
    Bp = max(8, _round_up(B, 8))
    if Bp != B:
        seq_t = jnp.pad(seq_t, ((0, 0), (0, Bp - B), (0, 0)))

    # 3) Time-parallel input projection: one (T*Bp, E) @ (E, 4H) Pallas matmul,
    #    then split per gate (one-time, tiny, outside the recurrence).
    xg = pallas_linear(seq_t.reshape(T * Bp, E), w_ih, params["b"],
                       out_dtype=jnp.float32)                # (T*Bp, 4H) f32
    xg = xg.reshape(T, Bp, 4, H)
    xg_i, xg_f, xg_g, xg_o = (xg[:, :, k, :] for k in range(4))

    # 4) Sequential LSTM recurrence (the only serial work).
    h_t = lstm_recurrence_pallas(xg_i, xg_f, xg_g, xg_o, w_hh4,
                                 h_dtype=cdt, t_chunk=t_chunk)  # (T, Bp, H)

    # 5) Hoisted vocab projection: one big parallel matmul on batch-major rows
    #    so logits come out batch-first — no (B, T, V)-sized transpose.
    h_bt = jnp.transpose(h_t, (1, 0, 2)).reshape(Bp * T, H)     # small (T*B*H)
    logits = pallas_linear(h_bt, w_out, params["b_out"],
                           out_dtype=jnp.float32)               # (Bp*T, V)
    return logits.reshape(Bp, T, V)[:B]


def decoder_forward_ref(params, features, captions):
    """Pure-JAX f32 reference (lax.scan LSTM) for correctness checking."""
    captions = captions[:, :-1]
    emb = jnp.take(params["emb"], captions, axis=0)
    seq = jnp.concatenate([features[:, None, :], emb], axis=1)
    x_tbe = jnp.transpose(seq, (1, 0, 2))
    H = params["w_hh"].shape[0]
    B = features.shape[0]

    def step(carry, x_t):
        h, c = carry
        gates = x_t @ params["w_ih"] + h @ params["w_hh"] + params["b"]
        i = jax.nn.sigmoid(gates[:, 0 * H:1 * H])
        f = jax.nn.sigmoid(gates[:, 1 * H:2 * H])
        g = jnp.tanh(gates[:, 2 * H:3 * H])
        o = jax.nn.sigmoid(gates[:, 3 * H:4 * H])
        c = f * c + i * g
        h = o * jnp.tanh(c)
        return (h, c), h @ params["w_out"] + params["b_out"]

    init = (jnp.zeros((B, H), jnp.float32), jnp.zeros((B, H), jnp.float32))
    _, logits_tbv = lax.scan(step, init, x_tbe)
    return jnp.transpose(logits_tbv, (1, 0, 2))


if __name__ == "__main__":
    # Small, module-consistent shapes (two grid steps of T_CHUNK=8 timesteps).
    batch = 2
    embed_size = 32
    hidden_size = 32
    vocab_size = 128
    cap_len = 16          # captions[:, :-1] -> 15 tokens, +1 feature step => T=16

    key = jax.random.PRNGKey(0)
    k_param, k_feat, k_cap = jax.random.split(key, 3)
    params = init_params(k_param, embed_size, hidden_size, vocab_size)
    features = jax.random.normal(k_feat, (batch, embed_size), jnp.float32)
    captions = jax.random.randint(k_cap, (batch, cap_len), 0, vocab_size, jnp.int32)

    ref = jax.block_until_ready(decoder_forward_ref(params, features, captions))

    # f32 path: exact structural check against the lax.scan reference.
    out_f32 = jax.block_until_ready(
        decoder_forward(params, features, captions, compute_dtype=jnp.float32))
    assert out_f32.shape == (batch, cap_len, vocab_size), out_f32.shape
    np.testing.assert_allclose(np.asarray(out_f32), np.asarray(ref),
                               rtol=1e-4, atol=1e-4)

    # bf16 weight/activation path (f32 accumulation + f32 gate math).
    out_bf16 = jax.block_until_ready(
        decoder_forward(params, features, captions, compute_dtype=jnp.bfloat16))
    assert out_bf16.shape == (batch, cap_len, vocab_size), out_bf16.shape
    np.testing.assert_allclose(np.asarray(out_bf16), np.asarray(ref),
                               rtol=5e-2, atol=5e-2)

    print("KERNEL_OK")
</pallas_src>

<mosaic_0001>
module attributes {stable_mosaic.version = 11 : i64} {
  func.func @_linear_kernel(%arg0: i32, %arg1: i32, %arg2: memref<128x32xf32, #tpu.memory_space<vmem>>, %arg3: memref<32x128xf32, #tpu.memory_space<vmem>>, %arg4: memref<1x128xf32, #tpu.memory_space<vmem>>, %arg5: memref<128x128xf32, #tpu.memory_space<vmem>>) attributes {dimension_semantics = [#tpu.dimension_semantics<parallel>, #tpu.dimension_semantics<parallel>], iteration_bounds = array<i64: 1, 1>, scalar_prefetch = 0 : i64, scratch_operands = 0 : i64, tpu.core_type = #tpu.core_type<tc>, window_params = [{transform_indices = @transform_0, window_bounds = array<i64: 128, 32>}, {transform_indices = @transform_1, window_bounds = array<i64: 32, 128>}, {transform_indices = @transform_2, window_bounds = array<i64: 1, 128>}, {transform_indices = @transform_3, window_bounds = array<i64: 128, 128>}]} {
    %c0 = arith.constant 0 : index
    %c0_0 = arith.constant 0 : index
    %0 = vector.load %arg2[%c0, %c0_0] : memref<128x32xf32, #tpu.memory_space<vmem>>, vector<128x32xf32>
    %c0_1 = arith.constant 0 : index
    %c0_2 = arith.constant 0 : index
    %1 = vector.load %arg3[%c0_1, %c0_2] : memref<32x128xf32, #tpu.memory_space<vmem>>, vector<32x128xf32>
    %cst = arith.constant dense<0.000000e+00> : vector<128x128xf32>
    %2 = tpu.matmul %0, %1, %cst {dimension_numbers = #tpu.dot_dimension_numbers<[1], [0], [0], [1], [0, 0, 1, 1], [], []>} : vector<128x32xf32>, vector<32x128xf32>, vector<128x128xf32> -> vector<128x128xf32>
    %c0_3 = arith.constant 0 : index
    %c0_4 = arith.constant 0 : index
    %3 = vector.load %arg4[%c0_3, %c0_4] : memref<1x128xf32, #tpu.memory_space<vmem>>, vector<1x128xf32>
    %4 = vector.broadcast %3 : vector<1x128xf32> to vector<128x128xf32>
    %5 = arith.addf %2, %4 : vector<128x128xf32>
    %c0_5 = arith.constant 0 : index
    %c0_6 = arith.constant 0 : index
    %6 = vector.load %arg5[%c0_5, %c0_6] : memref<128x128xf32, #tpu.memory_space<vmem>>, vector<128x128xf32>
    tpu.vector_store %arg5[%c0_5, %c0_6], %5 {strides = array<i32>} : memref<128x128xf32, #tpu.memory_space<vmem>>, vector<128x128xf32>,
    return
  }
  func.func @transform_0(%arg0: i32, %arg1: i32) -> (i32, i32) {
    %c0_i32 = arith.constant 0 : i32
    %c0_i32_0 = arith.constant 0 : i32
    return %arg0, %c0_i32 : i32, i32
  }
  func.func @transform_1(%arg0: i32, %arg1: i32) -> (i32, i32) {
    %c0_i32 = arith.constant 0 : i32
    %c0_i32_0 = arith.constant 0 : i32
    return %c0_i32, %arg1 : i32, i32
  }
  func.func @transform_2(%arg0: i32, %arg1: i32) -> (i32, i32) {
    %c0_i32 = arith.constant 0 : i32
    %c0_i32_0 = arith.constant 0 : i32
    return %c0_i32, %arg1 : i32, i32
  }
  func.func @transform_3(%arg0: i32, %arg1: i32) -> (i32, i32) {
    %c0_i32 = arith.constant 0 : i32
    return %arg0, %arg1 : i32, i32
  }
}

</mosaic_0001>

<bundles_post_ra>
// kernel: tpu_custom_call.1
= control target key start
LH: loop header
LB: loop body
LE: loop exit
PB: predicated region body
PF: predicated region fallthrough
CT: control target
= control target key end

     0   :  { %vm42_vm0 = vcmask 261120   ;;  %s490_s0 = inlined_call_operand.vmem [shape: f32[128,32], index: 0, kind: input, shape index: {}]   ;;  %s491_s1 = inlined_call_operand.vmem [shape: f32[32,128], index: 1, kind: input, shape index: {}]   ;;  %s492_s2 = inlined_call_operand.vmem [shape: f32[1,128], index: 2, kind: input, shape index: {}]   ;;  %s493_s3 = inlined_call_operand.hbm [shape: f32[128,128], index: 3, kind: output, shape index: {}]  }
   0x1   :  { %v31_v0 = vld [vmem:[%s491_s1] sm:$0xff]  ;;  %v32_v1 = vld [vmem:[%s491_s1 + $0x8] sm:$0xff]  ;;  %v33_v2 = vld [vmem:[%s491_s1 + $0x10] sm:$0xff] }
   0x2   :  { %v337_v3 = vpack.c.bf16 %v32_v1, %v31_v0  ;;  %v34_v4 = vld [vmem:[%s491_s1 + $0x18] sm:$0xff]  ;;  %v15_v5 = vld [vmem:[%s490_s0] sm:$0xff] }
   0x3   :  { %v23_v6 = vld [vmem:[%s490_s0 + $0x40] sm:$0xff]  ;;  %v341_v7 = vpack.c.bf16 %v34_v4, %v33_v2  ;;  %313 = vmatprep.mubr.msk.f32.mxu0 %vm42_vm0, %v15_v5 }
   0x4   :  { %325 = vmatprep.mubr.msk.f32.mxu1 %vm42_vm0, %v23_v6  ;;  %338 = vmatprep.subr.bf16.mxu0 %v337_v3 }
   0x5   :  { %345 = vmatprep.subr.bf16.mxu1 %v337_v3  ;;  %340 = vmatpush3.bf16.msra.mxu0 %v337_v3 }
   0x6   :  { %347 = vmatpush3.bf16.msra.mxu1 %v337_v3  ;;  %342 = vmatprep.subr.bf16.mxu0 %v341_v7 }
   0x7   :  { %346 = vmatprep.subr.bf16.mxu1 %v341_v7 }
   0x8   :  { %8 = vsyncpa [#allocation3], 0  ;;  %v16_v8 = vld [vmem:[%s490_s0 + $0x8] sm:$0xff]  ;;  %v17_v10 = vld [vmem:[%s490_s0 + $0x10] sm:$0xff] }
   0x9   :  { %344 = vmatpush3.bf16.msra.mxu0 %v341_v7  ;;  %v24_v9 = vld [vmem:[%s490_s0 + $0x48] sm:$0xff]  ;;  %v25_v11 = vld [vmem:[%s490_s0 + $0x50] sm:$0xff]  ;;  %v18_v12 = vld [vmem:[%s490_s0 + $0x18] sm:$0xff] }
   0xa   :  { %348 = vmatpush3.bf16.msra.mxu1 %v341_v7  ;;  %v26_v13 = vld [vmem:[%s490_s0 + $0x58] sm:$0xff]  ;;  %v19_v14 = vld [vmem:[%s490_s0 + $0x20] sm:$0xff]  ;;  %v20_v16 = vld [vmem:[%s490_s0 + $0x28] sm:$0xff] }
   0xb   :  { %v27_v15 = vld [vmem:[%s490_s0 + $0x60] sm:$0xff]  ;;  %v28_v17 = vld [vmem:[%s490_s0 + $0x68] sm:$0xff]  ;;  %v21_v18 = vld [vmem:[%s490_s0 + $0x30] sm:$0xff] }
   0xc   :  { %314 = vmatmul.mubr.msk.f32.vlgmr.msra.gmra.mrb[0].mxu0 %vm42_vm0, %v16_v8  ;;  %v29_v19 = vld [vmem:[%s490_s0 + $0x70] sm:$0xff]  ;;  %v22_v20 = vld [vmem:[%s490_s0 + $0x38] sm:$0xff]  ;;  %v268_v22 = vld [vmem:[%s492_s2] ss:$0 sm:$0xff] }
   0xd   :  { %326 = vmatmul.mubr.msk.f32.vlgmr.msra.gmra.mrb[0].mxu1 %vm42_vm0, %v24_v9  ;;  %316 = vmatprep.mubr.msk.f32.mxu0 %vm42_vm0, %v17_v10  ;;  %v30_v21 = vld [vmem:[%s490_s0 + $0x78] sm:$0xff]  ;;  %s376_s0 = smov [#allocation2]  }
   0xe   :  { %328 = vmatprep.mubr.msk.f32.mxu1 %vm42_vm0, %v25_v11  ;;  %s257_s2 = sshll.u32 %s376_s0, 4  ;;  %s258_s2 = int_to_ptr.vmem [resolvable:$true] %s257_s2 }
   0xf   :  { %s352_s25 = scalar_lea.vmem %s258_s2, 2048  ;;  %p357_p1 = scmp.lt.s32.totalorder %s258_s2, %s258_s2 }
  0x10   :  { %317 = vmatmul.mubr.msk.f32.gmra.mrb[2].mxu0 %vm42_vm0, %v18_v12  ;;  %p353_p0 = scmp.ne.s32.totalorder %s258_s2, %s352_s25  ;;  %p358_p2 = scmp.lt.s32.totalorder %s352_s25, %s352_s25 }
  0x11   :  { %329 = vmatmul.mubr.msk.f32.gmra.mrb[2].mxu1 %vm42_vm0, %v26_v13  ;;  %319 = vmatprep.mubr.msk.f32.mxu0 %vm42_vm0, %v19_v14 }
  0x12   :  { %331 = vmatprep.mubr.msk.f32.mxu1 %vm42_vm0, %v27_v15  ;;  %p359_p3 = por %p358_p2, %p357_p1 }
  0x14   :  { %320 = vmatmul.mubr.msk.f32.gmra.mrb[4].mxu0 %vm42_vm0, %v20_v16  ;;  %p360_p4 = pnand %p359_p3, %p353_p0 }
  0x15   :  { %332 = vmatmul.mubr.msk.f32.gmra.mrb[4].mxu1 %vm42_vm0, %v28_v17  ;;  %322 = vmatprep.mubr.msk.f32.mxu0 %vm42_vm0, %v21_v18 }
  0x16   :  { %334 = vmatprep.mubr.msk.f32.mxu1 %vm42_vm0, %v29_v19 }
  0x18   :  { %323 = vmatmul.mubr.msk.f32.gmra.mrb[6].mxu0 %vm42_vm0, %v22_v20 }
  0x19   :  { %335 = vmatmul.mubr.msk.f32.gmra.mrb[6].mxu1 %vm42_vm0, %v30_v21 }
  0xdf   :  { %v315_v23 = vpop.f32.mrb[0].mxu0 }
  0xe0   :  { %v327_v24 = vpop.f32.mrb[0].mxu1  ;;  %v163_v25 = vadd.f32 %v315_v23, %v268_v22  ;;  %v157_v27 = vpop.f32.mrb[1].mxu0 }
  0xe1   :  { %v203_v26 = vadd.f32 %v327_v24, %v268_v22  ;;  %v197_v28 = vpop.f32.mrb[1].mxu1  ;;  %v158_v29 = vadd.f32 %v268_v22, %v157_v27 }
  0xe2   :  { %v198_v30 = vadd.f32 %v268_v22, %v197_v28  ;;  %237 = vst [vmem:[#allocation2 + $0x8] sm:$0xff] %v163_v25 }
  0xe3   :  { %245 = vst [vmem:[#allocation2 + $0x48] sm:$0xff] %v203_v26  ;;  %236 = vst [vmem:[#allocation2] sm:$0xff] %v158_v29  ;;  %v318_v31 = vpop.f32.mrb[2].mxu0 }
  0xe4   :  { %244 = vst [vmem:[#allocation2 + $0x40] sm:$0xff] %v198_v30  ;;  %v330_v32 = vpop.f32.mrb[2].mxu1  ;;  %v173_v33 = vadd.f32 %v318_v31, %v268_v22  ;;  %v167_v35 = vpop.f32.mrb[3].mxu0 }
  0xe5   :  { %v213_v34 = vadd.f32 %v330_v32, %v268_v22  ;;  %v207_v36 = vpop.f32.mrb[3].mxu1  ;;  %v168_v37 = vadd.f32 %v268_v22, %v167_v35 }
  0xe6   :  { %v208_v38 = vadd.f32 %v268_v22, %v207_v36  ;;  %239 = vst [vmem:[#allocation2 + $0x18] sm:$0xff] %v173_v33 }
  0xe7   :  { %247 = vst [vmem:[#allocation2 + $0x58] sm:$0xff] %v213_v34  ;;  %238 = vst [vmem:[#allocation2 + $0x10] sm:$0xff] %v168_v37  ;;  %v321_v39 = vpop.f32.mrb[4].mxu0 }
  0xe8   :  { %246 = vst [vmem:[#allocation2 + $0x50] sm:$0xff] %v208_v38  ;;  %v333_v40 = vpop.f32.mrb[4].mxu1  ;;  %v183_v41 = vadd.f32 %v321_v39, %v268_v22  ;;  %v177_v43 = vpop.f32.mrb[5].mxu0 }
  0xe9   :  { %v223_v42 = vadd.f32 %v333_v40, %v268_v22  ;;  %v217_v44 = vpop.f32.mrb[5].mxu1  ;;  %v178_v45 = vadd.f32 %v268_v22, %v177_v43 }
  0xea   :  { %v218_v46 = vadd.f32 %v268_v22, %v217_v44  ;;  %241 = vst [vmem:[#allocation2 + $0x28] sm:$0xff] %v183_v41 }
  0xeb   :  { %249 = vst [vmem:[#allocation2 + $0x68] sm:$0xff] %v223_v42  ;;  %240 = vst [vmem:[#allocation2 + $0x20] sm:$0xff] %v178_v45  ;;  %v324_v47 = vpop.f32.mrb[6].mxu0 }
  0xec   :  { %248 = vst [vmem:[#allocation2 + $0x60] sm:$0xff] %v218_v46  ;;  %v336_v48 = vpop.f32.mrb[6].mxu1  ;;  %v193_v49 = vadd.f32 %v324_v47, %v268_v22  ;;  %v187_v51 = vpop.f32.mrb[7].mxu0 }
  0xed   :  { %v233_v50 = vadd.f32 %v336_v48, %v268_v22  ;;  %v227_v52 = vpop.f32.mrb[7].mxu1  ;;  %v188_v53 = vadd.f32 %v268_v22, %v187_v51 }
  0xee   :  { %v228_v54 = vadd.f32 %v268_v22, %v227_v52  ;;  %243 = vst [vmem:[#allocation2 + $0x38] sm:$0xff] %v193_v49 }
  0xef   :  { %251 = vst [vmem:[#allocation2 + $0x78] sm:$0xff] %v233_v50  ;;  %242 = vst [vmem:[#allocation2 + $0x30] sm:$0xff] %v188_v53 }
  0xf0   :  { %250 = vst [vmem:[#allocation2 + $0x70] sm:$0xff] %v228_v54 }
  0xf1   :  { %363 = shalt.err (!%p360_p4)
}
  0xf2   :  { %s364_s28 = scalar_lea.hbm %s493_s3, 2048 }
  0xf3   :  { %p365_p5 = scmp.ne.s32.totalorder %s493_s3, %s364_s28  ;;  %p368_p6 = scmp.lt.u32.totalorder %s364_s28, %s493_s3 }
  0xf5   :  { %p370_p7 = pnand %p368_p6, %p365_p5 }
  0xf7   :  { %373 = shalt.err (!%p370_p7)
}
  0xf8   :  { %s377_s6 = smov 128   ;;  %s378_s7 = smov 8  }
  0xf9   :  { %263 = dma.vmem_to_hbm [thread:$0]  %s258_s2, 2048, %s493_s3, [#allocation3], %s377_s6, %s377_s6, %s378_s7  }
  0xfa   :  { %374 = dma.done.wait [#allocation3], 2048  }
  0xfb   :  { %375 = vsyncadd [#allocation3], 4294965248 }
  0xfc   :  { %267 = vsyncpa [#allocation3], 1 }

</bundles_post_ra>
